<compile_context>
chip_gen: v7x
topology: tpu7x:2x2x1
jax: 0.10.0
libtpu: 0.0.40
codegen_flags: <defaults>
</compile_context>

<pallas_src>
import jax
import jax.numpy as jnp
from jax.experimental import pallas as pl
from jax.experimental.pallas import tpu as pltpu


# ---------------- model config (small, consistent with the module) -------------
BATCH = 2
SEQ = 8
INPUT_SIZE = 4
HIDDEN = 32
NUM_LAYERS = 2
FC_SIZES = [16]          # fc_sizes arg
OUTPUT_SIZE = 1
# fc_sizes_compat = [HIDDEN] + FC_SIZES + [OUTPUT_SIZE] = [32, 16, 1]
# fc = Linear(32,16) -> Dropout(p=0) -> Linear(16,1)   (no activation between)

H2 = 2 * HIDDEN          # packed [layer0 | layer1] hidden/cell width


def _dual_cell(g_both, c_cat):
    """Joint LSTM cell update for the wavefront pair.

    g_both: (B, 8H) gates for (layer-0 @ t+1, layer-1 @ t), column-interleaved
            as [i0 i1 | f0 f1 | g0 g1 | o0 o1] (each block H wide).
    c_cat:  (B, 2H) packed cell state [c0 | c1].
    Returns (h_cat, c_cat) in the same packed [layer0 | layer1] layout.
    """
    sig = jax.nn.sigmoid(g_both)          # one full-width EUP push
    th = jnp.tanh(g_both)                 # one full-width EUP push
    i_cat = sig[:, 0 * H2:1 * H2]
    f_cat = sig[:, 1 * H2:2 * H2]
    g_cat = th[:, 2 * H2:3 * H2]
    o_cat = sig[:, 3 * H2:4 * H2]
    c_new = f_cat * c_cat + i_cat * g_cat
    h_new = o_cat * jnp.tanh(c_new)
    return h_new, c_new


def passenger_lstm_kernel(
    x_ref,        # (T*B, I)   time-major flattened input
    w_in_ref,     # (I, 8H)    layer-0 input weights in interleaved cols, layer-1 cols = 0
    b_ext_ref,    # (1, 8H)    interleaved [b0 | b1] biases
    w_comb_ref,   # (2H, 8H)   packed recurrent weight [[whh0|wih1],[0|whh1]] (interleaved)
    wfc_ref,      # (1, H)     folded fc weight (fcw1 @ fcw0) as a lane row
    bfc_ref,      # (1, OUT)   folded fc bias
    out_ref,      # (B, OUT)
):
    B, T = BATCH, SEQ

    # Hoisted input projection for ALL timesteps (one matmul). Layer-0 columns
    # get x@wih0 + b0; layer-1 columns (zero weights) get b1 broadcast.
    xwb = (
        jnp.dot(x_ref[...], w_in_ref[...], preferred_element_type=jnp.float32)
        + b_ext_ref[...]
    )                                                          # (T*B, 8H)

    w_comb = w_comb_ref[...]
    b_ext = b_ext_ref[...]

    # Prologue: step-0 layer-0 cell. xwb[0:B] already holds g0_0 in the layer-0
    # columns (h0_{-1}=0 -> no recurrent term). The layer-1 half of the joint
    # update is garbage and is masked to zero (h1_{-1}=c1_{-1}=0).
    lane = jax.lax.broadcasted_iota(jnp.int32, (B, H2), 1)
    l0_mask = (lane < HIDDEN).astype(jnp.float32)              # [1..1 | 0..0]
    h_cat, c_cat = _dual_cell(xwb[0:B, :], jnp.zeros((B, H2), jnp.float32))
    h_cat = h_cat * l0_mask
    c_cat = c_cat * l0_mask                                    # [h0_0|0], [c0_0|0]

    # Wavefront loop (statically unrolled): iteration t does ONE combined
    # matmul producing layer-1 gates at step t and layer-0 gates at step t+1,
    # then ONE joint activation. h_cat/c_cat stay in packed [layer0|layer1]
    # lane layout, so no per-step concatenation is needed.
    for t in range(T - 1):
        comb = jnp.dot(h_cat, w_comb, preferred_element_type=jnp.float32)
        g_both = comb + xwb[(t + 1) * B:(t + 2) * B, :]
        h_cat, c_cat = _dual_cell(g_both, c_cat)               # -> [h0_{t+1}|h1_t]

    # Epilogue: final layer-1 cell at step T-1 (layer-0 half is unused garbage).
    comb = jnp.dot(h_cat, w_comb, preferred_element_type=jnp.float32)
    g_both = comb + b_ext
    h_cat, c_cat = _dual_cell(g_both, c_cat)
    h1_last = h_cat[:, HIDDEN:H2]                              # (B, H)

    # Folded fc head (no nonlinearity between the two Linears, Dropout p=0):
    # VPU multiply + XLU lane reduce — no MXU push on the tail.
    y = jnp.sum(h1_last * wfc_ref[...], axis=-1, keepdims=True) + bfc_ref[...]
    out_ref[...] = y.astype(out_ref.dtype)


def passenger_lstm_forward(x, params):
    B, T, I = x.shape
    # Time-major flatten so the hoisted projection is one contiguous matmul and
    # per-step reads are static row slices.
    x_tm = jnp.transpose(x, (1, 0, 2)).reshape(T * B, I)

    vmem = pl.BlockSpec(memory_space=pltpu.MemorySpace.VMEM)
    args = (
        x_tm,
        params["w_in_ext"], params["b_ext"], params["w_comb"],
        params["wfc_t"], params["bfc"],
    )
    return pl.pallas_call(
        passenger_lstm_kernel,
        out_shape=jax.ShapeDtypeStruct((B, OUTPUT_SIZE), jnp.float32),
        in_specs=[vmem] * len(args),
        out_specs=vmem,
        compiler_params=pltpu.CompilerParams(vmem_limit_bytes=2 << 20),
    )(*args)


# ---------------------- deterministic parameter init ---------------------------
def init_params(key):
    H, I, F0, OUT = HIDDEN, INPUT_SIZE, FC_SIZES[0], OUTPUT_SIZE
    scale = 1.0 / jnp.sqrt(jnp.float32(H))

    def u(k, shape):
        return jax.random.uniform(k, shape, jnp.float32, -1.0, 1.0) * scale

    ks = jax.random.split(key, 12)
    # PyTorch LSTM layout: W_ih (4H,in), W_hh (4H,H), b_ih (4H,), b_hh (4H,).
    wih0 = u(ks[0], (4 * H, I));  whh0 = u(ks[1], (4 * H, H))
    bih0 = u(ks[2], (4 * H,));    bhh0 = u(ks[3], (4 * H,))
    wih1 = u(ks[4], (4 * H, H));  whh1 = u(ks[5], (4 * H, H))
    bih1 = u(ks[6], (4 * H,));    bhh1 = u(ks[7], (4 * H,))
    fcw0 = u(ks[8], (F0, H));     fcb0 = u(ks[9], (F0,))
    fcw1 = u(ks[10], (OUT, F0));  fcb1 = u(ks[11], (OUT,))

    wih0_t, whh0_t = wih0.T, whh0.T                  # (I,4H), (H,4H)
    wih1_t, whh1_t = wih1.T, whh1.T                  # (H,4H), (H,4H)
    b0 = (bih0 + bhh0).reshape(1, 4 * H)
    b1 = (bih1 + bhh1).reshape(1, 4 * H)
    fcw0_t, fcw1_t = fcw0.T, fcw1.T                  # (H,F0), (F0,OUT)
    fcb0r = fcb0.reshape(1, F0)
    fcb1r = fcb1.reshape(1, OUT)

    def interleave(a0, a1):
        # (...,4H),(...,4H) in gate order [i f g o] -> (...,8H) ordered
        # [i0 i1 | f0 f1 | g0 g1 | o0 o1]  (layer0 / layer1 per gate).
        parts = []
        for g in range(4):
            parts.append(a0[..., g * H:(g + 1) * H])
            parts.append(a1[..., g * H:(g + 1) * H])
        return jnp.concatenate(parts, axis=-1)

    zI = jnp.zeros((I, 4 * H), jnp.float32)
    zH = jnp.zeros((H, 4 * H), jnp.float32)

    # Extended input projection: layer-0 cols = wih0, layer-1 cols = 0 (so the
    # hoisted matmul + b_ext leaves exactly b1 in the layer-1 columns).
    w_in_ext = interleave(wih0_t, zI)                            # (I, 8H)
    b_ext = interleave(b0, b1)                                   # (1, 8H)
    # Packed recurrent weight for the wavefront matmul:
    # rows 0:H  -> h0_t's contribution (whh0 to layer-0@t+1, wih1 to layer-1@t)
    # rows H:2H -> h1_{t-1}'s contribution (0 to layer-0, whh1 to layer-1).
    w_comb = jnp.concatenate(
        [interleave(whh0_t, wih1_t), interleave(zH, whh1_t)], axis=0
    )                                                            # (2H, 8H)
    # Folded fc head (valid: no activation between the two Linears, Dropout p=0).
    wfc = fcw0_t @ fcw1_t                                        # (H, OUT), OUT==1
    bfc = fcb0r @ fcw1_t + fcb1r                                 # (1, OUT)
    wfc_t = wfc.reshape(1, H)                                    # lane row (OUT==1)

    return dict(
        # packed kernel params
        w_in_ext=w_in_ext, b_ext=b_ext, w_comb=w_comb, wfc_t=wfc_t, bfc=bfc,
        # raw (transposed) params for the pure-JAX reference
        wih0_t=wih0_t, whh0_t=whh0_t, b0=b0,
        wih1_t=wih1_t, whh1_t=whh1_t, b1=b1,
        fcw0_t=fcw0_t, fcb0=fcb0r, fcw1_t=fcw1_t, fcb1=fcb1r,
    )


# ----------------------------- pure-JAX reference -------------------------------
def reference_forward(x, p):
    B = x.shape[0]
    H = HIDDEN

    def cell(inp, h, c, wih_t, whh_t, b):
        gates = inp @ wih_t + h @ whh_t + b
        i = jax.nn.sigmoid(gates[:, 0 * H:1 * H])
        f = jax.nn.sigmoid(gates[:, 1 * H:2 * H])
        g = jnp.tanh(gates[:, 2 * H:3 * H])
        o = jax.nn.sigmoid(gates[:, 3 * H:4 * H])
        c = f * c + i * g
        return o * jnp.tanh(c), c

    h0 = c0 = h1 = c1 = jnp.zeros((B, H), jnp.float32)
    for t in range(x.shape[1]):
        h0, c0 = cell(x[:, t, :], h0, c0, p["wih0_t"], p["whh0_t"], p["b0"])
        h1, c1 = cell(h0, h1, c1, p["wih1_t"], p["whh1_t"], p["b1"])
    y = h1 @ p["fcw0_t"] + p["fcb0"]
    y = y @ p["fcw1_t"] + p["fcb1"]
    return y


if __name__ == "__main__":
    key = jax.random.PRNGKey(0)
    k_x, k_p = jax.random.split(key)
    x = jax.random.normal(k_x, (BATCH, SEQ, INPUT_SIZE), jnp.float32)
    params = init_params(k_p)

    out = passenger_lstm_forward(x, params)
    out = jax.block_until_ready(out)

    ref = reference_forward(x, params)
    assert out.shape == (BATCH, OUTPUT_SIZE)
    assert jnp.allclose(out, ref, atol=1e-4, rtol=1e-4), (out, ref)
    print("KERNEL_OK")
</pallas_src>

<mosaic_0001>
module attributes {stable_mosaic.version = 11 : i64} {
  func.func @passenger_lstm_kernel(%arg0: memref<16x4xf32, #tpu.memory_space<vmem>>, %arg1: memref<4x256xf32, #tpu.memory_space<vmem>>, %arg2: memref<1x256xf32, #tpu.memory_space<vmem>>, %arg3: memref<64x256xf32, #tpu.memory_space<vmem>>, %arg4: memref<1x32xf32, #tpu.memory_space<vmem>>, %arg5: memref<1x1xf32, #tpu.memory_space<vmem>>, %arg6: memref<2x1xf32, #tpu.memory_space<vmem>>) attributes {dimension_semantics = [], scalar_prefetch = 0 : i64, scratch_operands = 0 : i64, tpu.core_type = #tpu.core_type<tc>} {
    %c0 = arith.constant 0 : index
    %c0_0 = arith.constant 0 : index
    %0 = vector.load %arg0[%c0, %c0_0] : memref<16x4xf32, #tpu.memory_space<vmem>>, vector<16x4xf32>
    %c0_1 = arith.constant 0 : index
    %c0_2 = arith.constant 0 : index
    %1 = vector.load %arg1[%c0_1, %c0_2] : memref<4x256xf32, #tpu.memory_space<vmem>>, vector<4x256xf32>
    %cst = arith.constant dense<0.000000e+00> : vector<16x256xf32>
    %2 = tpu.matmul %0, %1, %cst {dimension_numbers = #tpu.dot_dimension_numbers<[1], [0], [0], [1], [0, 0, 1, 1], [], []>} : vector<16x4xf32>, vector<4x256xf32>, vector<16x256xf32> -> vector<16x256xf32>
    %c0_3 = arith.constant 0 : index
    %c0_4 = arith.constant 0 : index
    %3 = vector.load %arg2[%c0_3, %c0_4] : memref<1x256xf32, #tpu.memory_space<vmem>>, vector<1x256xf32>
    %4 = vector.broadcast %3 : vector<1x256xf32> to vector<16x256xf32>
    %5 = arith.addf %2, %4 : vector<16x256xf32>
    %c0_5 = arith.constant 0 : index
    %c0_6 = arith.constant 0 : index
    %6 = vector.load %arg3[%c0_5, %c0_6] : memref<64x256xf32, #tpu.memory_space<vmem>>, vector<64x256xf32>
    %c0_7 = arith.constant 0 : index
    %c0_8 = arith.constant 0 : index
    %7 = vector.load %arg2[%c0_7, %c0_8] : memref<1x256xf32, #tpu.memory_space<vmem>>, vector<1x256xf32>
    %8 = tpu.iota {dimensions = array<i32: 1>} : vector<2x64xi32>
    %c32_i32 = arith.constant 32 : i32
    %9 = vector.broadcast %c32_i32 : i32 to vector<2x64xi32>
    %10 = arith.cmpi slt, %8, %9 : vector<2x64xi32>
    %11 = arith.extui %10 : vector<2x64xi1> to vector<2x64xi32>
    %12 = arith.sitofp %11 : vector<2x64xi32> to vector<2x64xf32>
    %13 = vector.extract_strided_slice %5 {offsets = [0, 0], sizes = [2, 256], strides = [1, 1]} : vector<16x256xf32> to vector<2x256xf32>
    %cst_9 = arith.constant 0.000000e+00 : f32
    %14 = vector.broadcast %cst_9 : f32 to vector<2x64xf32>
    %15 = arith.negf %13 : vector<2x256xf32>
    %16 = math.exp %15 : vector<2x256xf32>
    %cst_10 = arith.constant 1.000000e+00 : f32
    %17 = vector.broadcast %cst_10 : f32 to vector<2x256xf32>
    %18 = arith.addf %17, %16 : vector<2x256xf32>
    %19 = arith.divf %17, %18 : vector<2x256xf32>
    %20 = math.tanh %13 : vector<2x256xf32>
    %21 = vector.extract_strided_slice %19 {offsets = [0, 0], sizes = [2, 64], strides = [1, 1]} : vector<2x256xf32> to vector<2x64xf32>
    %22 = vector.extract_strided_slice %19 {offsets = [0, 64], sizes = [2, 64], strides = [1, 1]} : vector<2x256xf32> to vector<2x64xf32>
    %23 = vector.extract_strided_slice %20 {offsets = [0, 128], sizes = [2, 64], strides = [1, 1]} : vector<2x256xf32> to vector<2x64xf32>
    %24 = vector.extract_strided_slice %19 {offsets = [0, 192], sizes = [2, 64], strides = [1, 1]} : vector<2x256xf32> to vector<2x64xf32>
    %25 = arith.mulf %22, %14 : vector<2x64xf32>
    %26 = arith.mulf %21, %23 : vector<2x64xf32>
    %27 = arith.addf %25, %26 : vector<2x64xf32>
    %28 = math.tanh %27 : vector<2x64xf32>
    %29 = arith.mulf %24, %28 : vector<2x64xf32>
    %30 = arith.mulf %29, %12 : vector<2x64xf32>
    %31 = arith.mulf %27, %12 : vector<2x64xf32>
    %cst_11 = arith.constant dense<0.000000e+00> : vector<2x256xf32>
    %32 = tpu.matmul %30, %6, %cst_11 {dimension_numbers = #tpu.dot_dimension_numbers<[1], [0], [0], [1], [0, 0, 1, 1], [], []>} : vector<2x64xf32>, vector<64x256xf32>, vector<2x256xf32> -> vector<2x256xf32>
    %33 = vector.extract_strided_slice %5 {offsets = [2, 0], sizes = [2, 256], strides = [1, 1]} : vector<16x256xf32> to vector<2x256xf32>
    %34 = arith.addf %32, %33 : vector<2x256xf32>
    %35 = arith.negf %34 : vector<2x256xf32>
    %36 = math.exp %35 : vector<2x256xf32>
    %cst_12 = arith.constant 1.000000e+00 : f32
    %37 = vector.broadcast %cst_12 : f32 to vector<2x256xf32>
    %38 = arith.addf %37, %36 : vector<2x256xf32>
    %39 = arith.divf %37, %38 : vector<2x256xf32>
    %40 = math.tanh %34 : vector<2x256xf32>
    %41 = vector.extract_strided_slice %39 {offsets = [0, 0], sizes = [2, 64], strides = [1, 1]} : vector<2x256xf32> to vector<2x64xf32>
    %42 = vector.extract_strided_slice %39 {offsets = [0, 64], sizes = [2, 64], strides = [1, 1]} : vector<2x256xf32> to vector<2x64xf32>
    %43 = vector.extract_strided_slice %40 {offsets = [0, 128], sizes = [2, 64], strides = [1, 1]} : vector<2x256xf32> to vector<2x64xf32>
    %44 = vector.extract_strided_slice %39 {offsets = [0, 192], sizes = [2, 64], strides = [1, 1]} : vector<2x256xf32> to vector<2x64xf32>
    %45 = arith.mulf %42, %31 : vector<2x64xf32>
    %46 = arith.mulf %41, %43 : vector<2x64xf32>
    %47 = arith.addf %45, %46 : vector<2x64xf32>
    %48 = math.tanh %47 : vector<2x64xf32>
    %49 = arith.mulf %44, %48 : vector<2x64xf32>
    %cst_13 = arith.constant dense<0.000000e+00> : vector<2x256xf32>
    %50 = tpu.matmul %49, %6, %cst_13 {dimension_numbers = #tpu.dot_dimension_numbers<[1], [0], [0], [1], [0, 0, 1, 1], [], []>} : vector<2x64xf32>, vector<64x256xf32>, vector<2x256xf32> -> vector<2x256xf32>
    %51 = vector.extract_strided_slice %5 {offsets = [4, 0], sizes = [2, 256], strides = [1, 1]} : vector<16x256xf32> to vector<2x256xf32>
    %52 = arith.addf %50, %51 : vector<2x256xf32>
    %53 = arith.negf %52 : vector<2x256xf32>
    %54 = math.exp %53 : vector<2x256xf32>
    %cst_14 = arith.constant 1.000000e+00 : f32
    %55 = vector.broadcast %cst_14 : f32 to vector<2x256xf32>
    %56 = arith.addf %55, %54 : vector<2x256xf32>
    %57 = arith.divf %55, %56 : vector<2x256xf32>
    %58 = math.tanh %52 : vector<2x256xf32>
    %59 = vector.extract_strided_slice %57 {offsets = [0, 0], sizes = [2, 64], strides = [1, 1]} : vector<2x256xf32> to vector<2x64xf32>
    %60 = vector.extract_strided_slice %57 {offsets = [0, 64], sizes = [2, 64], strides = [1, 1]} : vector<2x256xf32> to vector<2x64xf32>
    %61 = vector.extract_strided_slice %58 {offsets = [0, 128], sizes = [2, 64], strides = [1, 1]} : vector<2x256xf32> to vector<2x64xf32>
    %62 = vector.extract_strided_slice %57 {offsets = [0, 192], sizes = [2, 64], strides = [1, 1]} : vector<2x256xf32> to vector<2x64xf32>
    %63 = arith.mulf %60, %47 : vector<2x64xf32>
    %64 = arith.mulf %59, %61 : vector<2x64xf32>
    %65 = arith.addf %63, %64 : vector<2x64xf32>
    %66 = math.tanh %65 : vector<2x64xf32>
    %67 = arith.mulf %62, %66 : vector<2x64xf32>
    %cst_15 = arith.constant dense<0.000000e+00> : vector<2x256xf32>
    %68 = tpu.matmul %67, %6, %cst_15 {dimension_numbers = #tpu.dot_dimension_numbers<[1], [0], [0], [1], [0, 0, 1, 1], [], []>} : vector<2x64xf32>, vector<64x256xf32>, vector<2x256xf32> -> vector<2x256xf32>
    %69 = vector.extract_strided_slice %5 {offsets = [6, 0], sizes = [2, 256], strides = [1, 1]} : vector<16x256xf32> to vector<2x256xf32>
    %70 = arith.addf %68, %69 : vector<2x256xf32>
    %71 = arith.negf %70 : vector<2x256xf32>
    %72 = math.exp %71 : vector<2x256xf32>
    %cst_16 = arith.constant 1.000000e+00 : f32
    %73 = vector.broadcast %cst_16 : f32 to vector<2x256xf32>
    %74 = arith.addf %73, %72 : vector<2x256xf32>
    %75 = arith.divf %73, %74 : vector<2x256xf32>
    %76 = math.tanh %70 : vector<2x256xf32>
    %77 = vector.extract_strided_slice %75 {offsets = [0, 0], sizes = [2, 64], strides = [1, 1]} : vector<2x256xf32> to vector<2x64xf32>
    %78 = vector.extract_strided_slice %75 {offsets = [0, 64], sizes = [2, 64], strides = [1, 1]} : vector<2x256xf32> to vector<2x64xf32>
    %79 = vector.extract_strided_slice %76 {offsets = [0, 128], sizes = [2, 64], strides = [1, 1]} : vector<2x256xf32> to vector<2x64xf32>
    %80 = vector.extract_strided_slice %75 {offsets = [0, 192], sizes = [2, 64], strides = [1, 1]} : vector<2x256xf32> to vector<2x64xf32>
    %81 = arith.mulf %78, %65 : vector<2x64xf32>
    %82 = arith.mulf %77, %79 : vector<2x64xf32>
    %83 = arith.addf %81, %82 : vector<2x64xf32>
    %84 = math.tanh %83 : vector<2x64xf32>
    %85 = arith.mulf %80, %84 : vector<2x64xf32>
    %cst_17 = arith.constant dense<0.000000e+00> : vector<2x256xf32>
    %86 = tpu.matmul %85, %6, %cst_17 {dimension_numbers = #tpu.dot_dimension_numbers<[1], [0], [0], [1], [0, 0, 1, 1], [], []>} : vector<2x64xf32>, vector<64x256xf32>, vector<2x256xf32> -> vector<2x256xf32>
    %87 = vector.extract_strided_slice %5 {offsets = [8, 0], sizes = [2, 256], strides = [1, 1]} : vector<16x256xf32> to vector<2x256xf32>
    %88 = arith.addf %86, %87 : vector<2x256xf32>
    %89 = arith.negf %88 : vector<2x256xf32>
    %90 = math.exp %89 : vector<2x256xf32>
    %cst_18 = arith.constant 1.000000e+00 : f32
    %91 = vector.broadcast %cst_18 : f32 to vector<2x256xf32>
    %92 = arith.addf %91, %90 : vector<2x256xf32>
    %93 = arith.divf %91, %92 : vector<2x256xf32>
    %94 = math.tanh %88 : vector<2x256xf32>
    %95 = vector.extract_strided_slice %93 {offsets = [0, 0], sizes = [2, 64], strides = [1, 1]} : vector<2x256xf32> to vector<2x64xf32>
    %96 = vector.extract_strided_slice %93 {offsets = [0, 64], sizes = [2, 64], strides = [1, 1]} : vector<2x256xf32> to vector<2x64xf32>
    %97 = vector.extract_strided_slice %94 {offsets = [0, 128], sizes = [2, 64], strides = [1, 1]} : vector<2x256xf32> to vector<2x64xf32>
    %98 = vector.extract_strided_slice %93 {offsets = [0, 192], sizes = [2, 64], strides = [1, 1]} : vector<2x256xf32> to vector<2x64xf32>
    %99 = arith.mulf %96, %83 : vector<2x64xf32>
    %100 = arith.mulf %95, %97 : vector<2x64xf32>
    %101 = arith.addf %99, %100 : vector<2x64xf32>
    %102 = math.tanh %101 : vector<2x64xf32>
    %103 = arith.mulf %98, %102 : vector<2x64xf32>
    %cst_19 = arith.constant dense<0.000000e+00> : vector<2x256xf32>
    %104 = tpu.matmul %103, %6, %cst_19 {dimension_numbers = #tpu.dot_dimension_numbers<[1], [0], [0], [1], [0, 0, 1, 1], [], []>} : vector<2x64xf32>, vector<64x256xf32>, vector<2x256xf32> -> vector<2x256xf32>
    %105 = vector.extract_strided_slice %5 {offsets = [10, 0], sizes = [2, 256], strides = [1, 1]} : vector<16x256xf32> to vector<2x256xf32>
    %106 = arith.addf %104, %105 : vector<2x256xf32>
    %107 = arith.negf %106 : vector<2x256xf32>
    %108 = math.exp %107 : vector<2x256xf32>
    %cst_20 = arith.constant 1.000000e+00 : f32
    %109 = vector.broadcast %cst_20 : f32 to vector<2x256xf32>
    %110 = arith.addf %109, %108 : vector<2x256xf32>
    %111 = arith.divf %109, %110 : vector<2x256xf32>
    %112 = math.tanh %106 : vector<2x256xf32>
    %113 = vector.extract_strided_slice %111 {offsets = [0, 0], sizes = [2, 64], strides = [1, 1]} : vector<2x256xf32> to vector<2x64xf32>
    %114 = vector.extract_strided_slice %111 {offsets = [0, 64], sizes = [2, 64], strides = [1, 1]} : vector<2x256xf32> to vector<2x64xf32>
    %115 = vector.extract_strided_slice %112 {offsets = [0, 128], sizes = [2, 64], strides = [1, 1]} : vector<2x256xf32> to vector<2x64xf32>
    %116 = vector.extract_strided_slice %111 {offsets = [0, 192], sizes = [2, 64], strides = [1, 1]} : vector<2x256xf32> to vector<2x64xf32>
    %117 = arith.mulf %114, %101 : vector<2x64xf32>
    %118 = arith.mulf %113, %115 : vector<2x64xf32>
    %119 = arith.addf %117, %118 : vector<2x64xf32>
    %120 = math.tanh %119 : vector<2x64xf32>
    %121 = arith.mulf %116, %120 : vector<2x64xf32>
    %cst_21 = arith.constant dense<0.000000e+00> : vector<2x256xf32>
    %122 = tpu.matmul %121, %6, %cst_21 {dimension_numbers = #tpu.dot_dimension_numbers<[1], [0], [0], [1], [0, 0, 1, 1], [], []>} : vector<2x64xf32>, vector<64x256xf32>, vector<2x256xf32> -> vector<2x256xf32>
    %123 = vector.extract_strided_slice %5 {offsets = [12, 0], sizes = [2, 256], strides = [1, 1]} : vector<16x256xf32> to vector<2x256xf32>
    %124 = arith.addf %122, %123 : vector<2x256xf32>
    %125 = arith.negf %124 : vector<2x256xf32>
    %126 = math.exp %125 : vector<2x256xf32>
    %cst_22 = arith.constant 1.000000e+00 : f32
    %127 = vector.broadcast %cst_22 : f32 to vector<2x256xf32>
    %128 = arith.addf %127, %126 : vector<2x256xf32>
    %129 = arith.divf %127, %128 : vector<2x256xf32>
    %130 = math.tanh %124 : vector<2x256xf32>
    %131 = vector.extract_strided_slice %129 {offsets = [0, 0], sizes = [2, 64], strides = [1, 1]} : vector<2x256xf32> to vector<2x64xf32>
    %132 = vector.extract_strided_slice %129 {offsets = [0, 64], sizes = [2, 64], strides = [1, 1]} : vector<2x256xf32> to vector<2x64xf32>
    %133 = vector.extract_strided_slice %130 {offsets = [0, 128], sizes = [2, 64], strides = [1, 1]} : vector<2x256xf32> to vector<2x64xf32>
    %134 = vector.extract_strided_slice %129 {offsets = [0, 192], sizes = [2, 64], strides = [1, 1]} : vector<2x256xf32> to vector<2x64xf32>
    %135 = arith.mulf %132, %119 : vector<2x64xf32>
    %136 = arith.mulf %131, %133 : vector<2x64xf32>
    %137 = arith.addf %135, %136 : vector<2x64xf32>
    %138 = math.tanh %137 : vector<2x64xf32>
    %139 = arith.mulf %134, %138 : vector<2x64xf32>
    %cst_23 = arith.constant dense<0.000000e+00> : vector<2x256xf32>
    %140 = tpu.matmul %139, %6, %cst_23 {dimension_numbers = #tpu.dot_dimension_numbers<[1], [0], [0], [1], [0, 0, 1, 1], [], []>} : vector<2x64xf32>, vector<64x256xf32>, vector<2x256xf32> -> vector<2x256xf32>
    %141 = vector.extract_strided_slice %5 {offsets = [14, 0], sizes = [2, 256], strides = [1, 1]} : vector<16x256xf32> to vector<2x256xf32>
    %142 = arith.addf %140, %141 : vector<2x256xf32>
    %143 = arith.negf %142 : vector<2x256xf32>
    %144 = math.exp %143 : vector<2x256xf32>
    %cst_24 = arith.constant 1.000000e+00 : f32
    %145 = vector.broadcast %cst_24 : f32 to vector<2x256xf32>
    %146 = arith.addf %145, %144 : vector<2x256xf32>
    %147 = arith.divf %145, %146 : vector<2x256xf32>
    %148 = math.tanh %142 : vector<2x256xf32>
    %149 = vector.extract_strided_slice %147 {offsets = [0, 0], sizes = [2, 64], strides = [1, 1]} : vector<2x256xf32> to vector<2x64xf32>
    %150 = vector.extract_strided_slice %147 {offsets = [0, 64], sizes = [2, 64], strides = [1, 1]} : vector<2x256xf32> to vector<2x64xf32>
    %151 = vector.extract_strided_slice %148 {offsets = [0, 128], sizes = [2, 64], strides = [1, 1]} : vector<2x256xf32> to vector<2x64xf32>
    %152 = vector.extract_strided_slice %147 {offsets = [0, 192], sizes = [2, 64], strides = [1, 1]} : vector<2x256xf32> to vector<2x64xf32>
    %153 = arith.mulf %150, %137 : vector<2x64xf32>
    %154 = arith.mulf %149, %151 : vector<2x64xf32>
    %155 = arith.addf %153, %154 : vector<2x64xf32>
    %156 = math.tanh %155 : vector<2x64xf32>
    %157 = arith.mulf %152, %156 : vector<2x64xf32>
    %cst_25 = arith.constant dense<0.000000e+00> : vector<2x256xf32>
    %158 = tpu.matmul %157, %6, %cst_25 {dimension_numbers = #tpu.dot_dimension_numbers<[1], [0], [0], [1], [0, 0, 1, 1], [], []>} : vector<2x64xf32>, vector<64x256xf32>, vector<2x256xf32> -> vector<2x256xf32>
    %159 = vector.broadcast %7 : vector<1x256xf32> to vector<2x256xf32>
    %160 = arith.addf %158, %159 : vector<2x256xf32>
    %161 = arith.negf %160 : vector<2x256xf32>
    %162 = math.exp %161 : vector<2x256xf32>
    %cst_26 = arith.constant 1.000000e+00 : f32
    %163 = vector.broadcast %cst_26 : f32 to vector<2x256xf32>
    %164 = arith.addf %163, %162 : vector<2x256xf32>
    %165 = arith.divf %163, %164 : vector<2x256xf32>
    %166 = math.tanh %160 : vector<2x256xf32>
    %167 = vector.extract_strided_slice %165 {offsets = [0, 0], sizes = [2, 64], strides = [1, 1]} : vector<2x256xf32> to vector<2x64xf32>
    %168 = vector.extract_strided_slice %165 {offsets = [0, 64], sizes = [2, 64], strides = [1, 1]} : vector<2x256xf32> to vector<2x64xf32>
    %169 = vector.extract_strided_slice %166 {offsets = [0, 128], sizes = [2, 64], strides = [1, 1]} : vector<2x256xf32> to vector<2x64xf32>
    %170 = vector.extract_strided_slice %165 {offsets = [0, 192], sizes = [2, 64], strides = [1, 1]} : vector<2x256xf32> to vector<2x64xf32>
    %171 = arith.mulf %168, %155 : vector<2x64xf32>
    %172 = arith.mulf %167, %169 : vector<2x64xf32>
    %173 = arith.addf %171, %172 : vector<2x64xf32>
    %174 = math.tanh %173 : vector<2x64xf32>
    %175 = arith.mulf %170, %174 : vector<2x64xf32>
    %176 = vector.extract_strided_slice %175 {offsets = [0, 32], sizes = [2, 32], strides = [1, 1]} : vector<2x64xf32> to vector<2x32xf32>
    %c0_27 = arith.constant 0 : index
    %c0_28 = arith.constant 0 : index
    %177 = vector.load %arg4[%c0_27, %c0_28] : memref<1x32xf32, #tpu.memory_space<vmem>>, vector<1x32xf32>
    %178 = vector.broadcast %177 : vector<1x32xf32> to vector<2x32xf32>
    %179 = arith.mulf %176, %178 : vector<2x32xf32>
    %cst_29 = arith.constant dense<0.000000e+00> : vector<2xf32>
    %180 = vector.multi_reduction <add>, %179, %cst_29 [1] : vector<2x32xf32> to vector<2xf32>
    %181 = vector.shape_cast %180 : vector<2xf32> to vector<2x1xf32>
    %c0_30 = arith.constant 0 : index
    %c0_31 = arith.constant 0 : index
    %182 = vector.load %arg5[%c0_30, %c0_31] : memref<1x1xf32, #tpu.memory_space<vmem>>, vector<1x1xf32>
    %183 = vector.broadcast %182 : vector<1x1xf32> to vector<2x1xf32>
    %184 = arith.addf %181, %183 : vector<2x1xf32>
    %c0_32 = arith.constant 0 : index
    %c0_33 = arith.constant 0 : index
    %185 = vector.load %arg6[%c0_32, %c0_33] : memref<2x1xf32, #tpu.memory_space<vmem>>, vector<2x1xf32>
    tpu.vector_store %arg6[%c0_32, %c0_33], %184 {strides = array<i32>} : memref<2x1xf32, #tpu.memory_space<vmem>>, vector<2x1xf32>,
    return
  }
}

</mosaic_0001>

<bundles_post_ra>
// kernel: tpu_custom_call.1
= control target key start
LH: loop header
LB: loop body
LE: loop exit
PB: predicated region body
PF: predicated region fallthrough
CT: control target
= control target key end

     0   :  { %s1576_s0 = inlined_call_operand.vmem [shape: f32[16,4], index: 0, kind: input, shape index: {}]   ;;  %s1577_s1 = inlined_call_operand.vmem [shape: f32[4,256], index: 1, kind: input, shape index: {}]   ;;  %s1578_s2 = inlined_call_operand.vmem [shape: f32[1,256], index: 2, kind: input, shape index: {}]   ;;  %s1579_s3 = inlined_call_operand.hbm [shape: f32[64,256], index: 3, kind: input, shape index: {}]   ;;  %s1580_s4 = inlined_call_operand.vmem [shape: f32[1,32], index: 4, kind: input, shape index: {}]   ;;  %s1581_s5 = inlined_call_operand.<no memory space> [shape: f32[1,1], index: 5, kind: input, shape index: {}]   ;;  %s1582_s6 = inlined_call_operand.vmem [shape: f32[2,1], index: 6, kind: output, shape index: {}]  }
   0x1   :  { %v11_v0 = vstv %s1581_s5 }
   0x2   :  { %12 = vst [vmem:[#allocation2] sm:$0x1] %v11_v0 }
   0x3   :  { %13 = vsyncpa [#allocation4], 0  ;;  %s1341_s23 = smov [#allocation3]   ;;  %s1317_s27 = scalar_lea.hbm %s1579_s3, 2048 }
   0x4   :  { %s25_s24 = sshll.u32 %s1341_s23, 4  ;;  %p1318_p0 = scmp.ne.s32.totalorder %s1579_s3, %s1317_s27  ;;  %s26_s24 = int_to_ptr.vmem [resolvable:$true] %s25_s24 }
   0x5   :  { %p1321_p1 = scmp.lt.u32.totalorder %s1317_s27, %s1579_s3 }
   0x7   :  { %p1323_p2 = pnand %p1321_p1, %p1318_p0 }
   0x9   :  { %1326 = shalt.err (!%p1323_p2)
}
   0xa   :  { %s1327_s5 = scalar_lea.vmem %s26_s24, 2048  ;;  %p1332_p4 = scmp.lt.s32.totalorder %s26_s24, %s26_s24 }
   0xb   :  { %p1328_p3 = scmp.ne.s32.totalorder %s26_s24, %s1327_s5  ;;  %p1333_p5 = scmp.lt.s32.totalorder %s1327_s5, %s1327_s5 }
   0xd   :  { %p1334_p6 = por %p1333_p5, %p1332_p4 }
   0xf   :  { %p1335_p7 = pnand %p1334_p6, %p1328_p3 }
  0x11   :  { %1338 = shalt.err (!%p1335_p7)
}
  0x12   :  { %s1342_s8 = smov 256   ;;  %s1343_s9 = smov 16  }
  0x13   :  { %31 = dma.hbm_to_vmem [thread:$0]  %s1579_s3, 2048, %s26_s24, [#allocation4], %s1342_s8, %s1342_s8, %s1343_s9  }
  0x14   :  { %1339 = dma.done.wait [#allocation4], 2048  }
  0x15   :  { %1340 = vsyncadd [#allocation4], 4294965248  ;;  %v1344_v1 = vmov 0.0   ;;  %v41_v2 = vld [vmem:[%s1577_s1] sm:$0xff]  ;;  %vm63_vm0 = vcmask 1043456   ;;  %vm56_vm1 = vcmask 31744   ;;  %v44_v5 = vlaneseq }
  0x16   :  { %132 = vmatprep.mubr.f32.mxu0 %v1344_v1  ;;  %270 = vmatprep.mubr.f32.mxu1 %v1344_v1  ;;  %v55_v3 = vcombine.high %v41_v2, %v41_v2  ;;  %v39_v4 = vld [vmem:[%s1576_s0] sm:$0xff]  ;;  %s1345_s1 = smov 64   ;;  %v146_v24 = vld [vmem:[#allocation3 + $0x8] sm:$0xff]  ;;  %v147_v28 = vld [vmem:[#allocation3 + $0x10] sm:$0xff]  ;;  %vm203_vm3 = vcmask 523264   ;;  %s1346_s19 = smov 96  }
  0x17   :  { %v45_v6 = vshrl.u32 %v44_v5, 7  ;;  %v42_v8 = vld [vmem:[%s1578_s2] sm:$0x3]  ;;  %v162_v19 = vand.u32 127, %v44_v5  ;;  %v150_v29 = vld [vmem:[#allocation3 + $0x28] sm:$0xff]  ;;  %v151_v34 = vld [vmem:[#allocation3 + $0x30] sm:$0xff] }
  0x18   :  { %1040 = vmatprep.subr.msk.mxu0 %vm63_vm0, %v55_v3  ;;  %v148_v25 = vld [vmem:[#allocation3 + $0x18] sm:$0xff]  ;;  %v145_v26 = vld [vmem:[#allocation3] sm:$0xff]  ;;  %v154_v35 = vld [vmem:[#allocation3 + $0x48] sm:$0xff]  ;;  %vm1021_vm4 = vcmask 254976   ;;  %vm1033_vm5 = vcmask 1024  }
  0x19   :  { %1041 = vmatpush1.msk.msra.mxu0 %vm63_vm0, %v41_v2  ;;  %v46_v7 = vsub.s32 0, %v45_v6  ;;  %v50_v14 = vsub.s32 1, %v45_v6  ;;  %vm163_vm2 = vcmp.lt.s32.totalorder %v162_v19, 32  ;;  %v1426_v27 = vpack.c.bf16 %v148_v25, %v146_v24  ;;  %v152_v30 = vld [vmem:[#allocation3 + $0x38] sm:$0xff]  ;;  %v149_v33 = vld [vmem:[#allocation3 + $0x20] sm:$0xff]  ;;  %v155_v40 = vld [vmem:[#allocation3 + $0x50] sm:$0xff] }
  0x1a   :  { %1042 = vmatmul.mubr.msk.f32.vlgmr.msra.gmra.mrb[0].mxu0 %vm56_vm1, %v39_v4  ;;  %v1044_v23 = vsel %vm163_vm2, 1.0, %v1344_v1  ;;  %v1428_v31 = vpack.c.bf16 %v147_v28, %v145_v26  ;;  %v1430_v32 = vpack.c.bf16 %v152_v30, %v150_v29  ;;  %v156_v36 = vld [vmem:[#allocation3 + $0x58] sm:$0xff]  ;;  %v1435_v37 = vpack.c.bf16 %v151_v34, %v149_v33  ;;  %v153_v39 = vld [vmem:[#allocation3 + $0x40] sm:$0xff]  ;;  %v158_v41 = vld [vmem:[#allocation3 + $0x68] sm:$0xff] }
  0x1b   :  { %138 = vmatprep.mubr.f32.mxu0 %v1344_v1  ;;  %v1411_v9 = vrot.slane %v42_v8, %v46_v7  ;;  %v1417_v15 = vrot.slane %v42_v8, %v50_v14  ;;  %1074 = vmatprep.subr.bf16.mxu1 %v1426_v27  ;;  %v1439_v38 = vpack.c.bf16 %v156_v36, %v154_v35  ;;  %v160_v42 = vld [vmem:[#allocation3 + $0x78] sm:$0xff]  ;;  %v157_v45 = vld [vmem:[#allocation3 + $0x60] sm:$0xff]  ;;  %v159_v46 = vld [vmem:[#allocation3 + $0x70] sm:$0xff] }
  0x1c   :  { %1090 = vmatprep.subr.bf16.mxu0 %v1426_v27  ;;  %1076 = vmatpush1.bf16.msra.mxu1 %v1428_v31  ;;  %v1443_v43 = vpack.c.bf16 %v155_v40, %v153_v39  ;;  %v1447_v44 = vpack.c.bf16 %v160_v42, %v158_v41  ;;  %v1451_v47 = vpack.c.bf16 %v159_v46, %v157_v45 }
  0x1d   :  { %1092 = vmatpush1.bf16.msra.mxu0 %v1428_v31  ;;  %1078 = vmatprep.subr.bf16.mxu1 %v1430_v32 }
  0x1e   :  { %1094 = vmatprep.subr.bf16.mxu0 %v1430_v32 }
  0x20   :  { %1080 = vmatpush1.bf16.msra.mxu1 %v1435_v37 }
  0x21   :  { %1096 = vmatpush1.bf16.msra.mxu0 %v1435_v37  ;;  %1082 = vmatprep.subr.bf16.mxu1 %v1439_v38 }
  0x22   :  { %1098 = vmatprep.subr.bf16.mxu0 %v1439_v38 }
  0x24   :  { %1084 = vmatpush1.bf16.msra.mxu1 %v1443_v43 }
  0x25   :  { %1100 = vmatpush1.bf16.msra.mxu0 %v1443_v43  ;;  %1086 = vmatprep.subr.bf16.mxu1 %v1447_v44 }
  0x26   :  { %1102 = vmatprep.subr.bf16.mxu0 %v1447_v44 }
  0x28   :  { %1088 = vmatpush1.bf16.msra.mxu1 %v1451_v47 }
  0x29   :  { %1104 = vmatpush1.bf16.msra.mxu0 %v1451_v47  ;;  %1106 = vmatprep.subr.bf16.mxu1 %v1426_v27 }
  0x2a   :  { %1122 = vmatprep.subr.bf16.mxu0 %v1426_v27 }
  0xed   :  { %v134_v10 = vpop.f32.mrb[0].mxu0 }
  0xee   :  { %v1414_v11 = vadd.f32 %v134_v10, %v1411_v9  ;;  %v136_v12 = vpop.f32.mrb[1].mxu0 }
  0xef   :  { %v1420_v16 = vadd.f32 %v136_v12, %v1417_v15 }
  0xf0   :  { %v1045_v13 = vmul.f32 -1.442695, %v1414_v11  ;;  %v199_v60 = vrot.slane %v1414_v11, 2  ;;  %v302_v28 = vrot.slane %v1414_v11, 4 }
  0xf1   :  { %v1046_v48 = vmul.f32 -1.442695, %v1420_v16  ;;  %v200_v62 = vrot.slane %v1420_v16, 2  ;;  %v303_v30 = vrot.slane %v1420_v16, 4 }
  0xf2   :  { %1209 = vpow2.f32 %v1045_v13  ;;  %v40_v13 = vld [vmem:[%s1576_s0 + $0x8] sm:$0xff] }
  0xf3   :  { %1211 = vtanh.f32 %v1420_v16  ;;  %1043 = vmatmul.mubr.msk.f32.gmra.mrb[2].mxu0 %vm56_vm1, %v40_v13 }
  0xf4   :  { %372 = vmatprep.mubr.f32.mxu0 %v1344_v1 }
  0xfc   :  { %v1210_v17 = vpop.eup %1209 }
  0xfd   :  { %v172_v18 = vadd.f32 1.0, %v1210_v17  ;;  %v1212_v20 = vpop.eup %1211 }
  0xff   :  { %1213 = vrcp.f32 %v172_v18 }
 0x100   :  { %1215 = vpow2.f32 %v1046_v48 }
 0x109   :  { %v1214_v21 = vpop.eup %1213 }
 0x10a   :  { %v180_v22 = vmul.f32 %v1214_v21, %v1212_v20  ;;  %v1216_v49 = vpop.eup %1215  ;;  %v179_v51 = vmul.f32 0.0, %v1214_v21 }
 0x10b   :  { %v173_v50 = vadd.f32 1.0, %v1216_v49 }
 0x10c   :  { %182 = vrot.lane.b32.xlu0 %v180_v22, %s1345_s1 }
 0x10d   :  { %1217 = vrcp.f32 %v173_v50 }
 0x110   :  { %189 = vrot.lane.b32.xlu0 %v1044_v23, %s1345_s1 }
 0x117   :  { %v1218_v54 = vpop.eup %1217 }
 0x17e   :  { %v183_v52 = vpop.permute.xlu0 %182 }
 0x17f   :  { %v185_v53 = vadd.f32 %v183_v52, %v179_v51 }
 0x181   :  { %1219 = vtanh.f32 %v185_v53 }
 0x182   :  { %v190_v57 = vpop.permute.xlu0 %189 }
 0x183   :  { %v193_v7 = vmul.f32 %v190_v57, %v185_v53 }
 0x18b   :  { %v1220_v55 = vpop.eup %1219 }
 0x18c   :  { %v187_v56 = vmul.f32 %v1220_v55, %v1218_v54 }
 0x18e   :  { %v192_v58 = vmul.f32 %v190_v57, %v187_v56  ;;  %v404_v57 = vrot.slane %v1414_v11, 6 }
 0x190   :  { %195 = vrot.lane.b32.xlu1 %v192_v58, %s1345_s1 }
 0x1c6   :  { %v1481_v24 = vpop.f32.mrb[2].mxu0 }
 0x1c7   :  { %v1483_v25 = vpop.f32.mrb[3].mxu0 }
 0x202   :  { %v196_v59 = vpop.permute.xlu1 %195 }
 0x203   :  { %1047 = vmatmul.mubr.msk.f32.vlgmr.msra.gmra.mrb[0].mxu1 %vm203_vm3, %v196_v59  ;;  %v405_v59 = vrot.slane %v1420_v16, 6 }
 0x204   :  { %1108 = vmatpush1.bf16.msra.mxu1 %v1428_v31  ;;  %474 = vmatprep.mubr.f32.mxu1 %v1344_v1 }
 0x205   :  { %1110 = vmatprep.subr.bf16.mxu1 %v1430_v32 }
 0x208   :  { %1112 = vmatpush1.bf16.msra.mxu1 %v1435_v37 }
 0x209   :  { %1114 = vmatprep.subr.bf16.mxu1 %v1439_v38 }
 0x20c   :  { %1116 = vmatpush1.bf16.msra.mxu1 %v1443_v43 }
 0x20d   :  { %1118 = vmatprep.subr.bf16.mxu1 %v1447_v44 }
 0x210   :  { %1120 = vmatpush1.bf16.msra.mxu1 %v1451_v47 }
 0x211   :  { %1138 = vmatprep.subr.bf16.mxu1 %v1426_v27 }
 0x2d6   :  { %v272_v61 = vpop.f32.mrb[0].mxu1 }
 0x2d7   :  { %v273_v63 = vadd.f32 %v272_v61, %v199_v60  ;;  %v274_v0 = vpop.f32.mrb[1].mxu1 }
 0x2d8   :  { %v275_v2 = vadd.f32 %v274_v0, %v200_v62 }
 0x2d9   :  { %v1048_v3 = vmul.f32 -1.442695, %v273_v63 }
 0x2da   :  { %v1049_v14 = vmul.f32 -1.442695, %v275_v2 }
 0x2db   :  { %1221 = vpow2.f32 %v1048_v3 }
 0x2dc   :  { %1223 = vtanh.f32 %v275_v2 }
 0x2e5   :  { %v1222_v4 = vpop.eup %1221 }
 0x2e6   :  { %v283_v5 = vadd.f32 1.0, %v1222_v4  ;;  %v1224_v6 = vpop.eup %1223 }
 0x2e8   :  { %1225 = vrcp.f32 %v283_v5 }
 0x2e9   :  { %1227 = vpow2.f32 %v1049_v14 }
 0x2f2   :  { %v1226_v8 = vpop.eup %1225 }
 0x2f3   :  { %v291_v10 = vmul.f32 %v1226_v8, %v1224_v6  ;;  %v290_v12 = vmul.f32 %v1226_v8, %v193_v7  ;;  %v1228_v17 = vpop.eup %1227 }
 0x2f4   :  { %v284_v18 = vadd.f32 1.0, %v1228_v17 }
 0x2f5   :  { %293 = vrot.lane.b32.xlu1 %v291_v10, %s1345_s1 }
 0x2f6   :  { %1229 = vrcp.f32 %v284_v18  ;;  %v1525_v18 = vadd.f32 %v1481_v24, %v1411_v9 }
 0x300   :  { %v1230_v21 = vpop.eup %1229 }
 0x367   :  { %v294_v19 = vpop.permute.xlu1 %293 }
 0x368   :  { %v296_v20 = vadd.f32 %v294_v19, %v290_v12 }
 0x36a   :  { %1231 = vtanh.f32 %v296_v20 }
 0x374   :  { %v1232_v22 = vpop.eup %1231 }
 0x375   :  { %v298_v23 = vmul.f32 %v1232_v22, %v1230_v21 }
 0x377   :  { %300 = vrot.lane.b32.xlu0 %v298_v23, %s1345_s1  ;;  %v1530_v23 = vadd.f32 %v1483_v25, %v1417_v15 }
 0x3e9   :  { %v301_v26 = vpop.permute.xlu0 %300 }
 0x3ea   :  { %1050 = vmatmul.mubr.msk.f32.vlgmr.msra.gmra.mrb[4].mxu0 %vm203_vm3, %v301_v26 }
 0x3eb   :  { %1124 = vmatpush1.bf16.msra.mxu0 %v1428_v31  ;;  %572 = vmatprep.mubr.f32.mxu0 %v1344_v1 }
 0x3ec   :  { %1126 = vmatprep.subr.bf16.mxu0 %v1430_v32 }
 0x3ef   :  { %1128 = vmatpush1.bf16.msra.mxu0 %v1435_v37 }
 0x3f0   :  { %1130 = vmatprep.subr.bf16.mxu0 %v1439_v38 }
 0x3f3   :  { %1132 = vmatpush1.bf16.msra.mxu0 %v1443_v43 }
 0x3f4   :  { %1134 = vmatprep.subr.bf16.mxu0 %v1447_v44 }
 0x3f7   :  { %1136 = vmatpush1.bf16.msra.mxu0 %v1451_v47 }
 0x3f8   :  { %1154 = vmatprep.subr.bf16.mxu0 %v1426_v27 }
 0x4bd   :  { %v374_v29 = vpop.f32.mrb[4].mxu0 }
 0x4be   :  { %v375_v33 = vadd.f32 %v374_v29, %v302_v28  ;;  %v376_v34 = vpop.f32.mrb[5].mxu0 }
 0x4bf   :  { %v377_v35 = vadd.f32 %v376_v34, %v303_v30 }
 0x4c0   :  { %v1051_v36 = vmul.f32 -1.442695, %v375_v33 }
 0x4c1   :  { %v1052_v46 = vmul.f32 -1.442695, %v377_v35 }
 0x4c2   :  { %1233 = vpow2.f32 %v1051_v36 }
 0x4c3   :  { %1235 = vtanh.f32 %v377_v35 }
 0x4cc   :  { %v1234_v39 = vpop.eup %1233 }
 0x4cd   :  { %v385_v40 = vadd.f32 1.0, %v1234_v39  ;;  %v1236_v41 = vpop.eup %1235 }
 0x4cf   :  { %1237 = vrcp.f32 %v385_v40 }
 0x4d0   :  { %1239 = vpow2.f32 %v1052_v46  ;;  %v606_v46 = vrot.slane %v1525_v18, 2 }
 0x4d9   :  { %v1238_v42 = vpop.eup %1237 }
 0x4da   :  { %v393_v45 = vmul.f32 %v1238_v42, %v1236_v41  ;;  %v1240_v48 = vpop.eup %1239  ;;  %v392_v50 = vmul.f32 %v1238_v42, %v296_v20 }
 0x4db   :  { %v386_v49 = vadd.f32 1.0, %v1240_v48 }
 0x4dc   :  { %395 = vrot.lane.b32.xlu1 %v393_v45, %s1345_s1 }
 0x4dd   :  { %1241 = vrcp.f32 %v386_v49 }
 0x4e7   :  { %v1242_v53 = vpop.eup %1241 }
 0x54e   :  { %v396_v51 = vpop.permute.xlu1 %395 }
 0x54f   :  { %v398_v52 = vadd.f32 %v396_v51, %v392_v50 }
 0x551   :  { %1243 = vtanh.f32 %v398_v52 }
 0x55b   :  { %v1244_v54 = vpop.eup %1243 }
 0x55c   :  { %v400_v55 = vmul.f32 %v1244_v54, %v1242_v53 }
 0x55e   :  { %402 = vrot.lane.b32.xlu0 %v400_v55, %s1345_s1 }
 0x5d0   :  { %v403_v56 = vpop.permute.xlu0 %402 }
 0x5d1   :  { %1053 = vmatmul.mubr.msk.f32.vlgmr.msra.gmra.mrb[2].mxu1 %vm203_vm3, %v403_v56 }
 0x5d2   :  { %1140 = vmatpush1.bf16.msra.mxu1 %v1428_v31  ;;  %676 = vmatprep.mubr.f32.mxu1 %v1344_v1 }
 0x5d3   :  { %1142 = vmatprep.subr.bf16.mxu1 %v1430_v32 }
 0x5d6   :  { %1144 = vmatpush1.bf16.msra.mxu1 %v1435_v37 }
 0x5d7   :  { %1146 = vmatprep.subr.bf16.mxu1 %v1439_v38 }
 0x5da   :  { %1148 = vmatpush1.bf16.msra.mxu1 %v1443_v43 }
 0x5db   :  { %1150 = vmatprep.subr.bf16.mxu1 %v1447_v44 }
 0x5de   :  { %1152 = vmatpush1.bf16.msra.mxu1 %v1451_v47 }
 0x5df   :  { %1170 = vmatprep.subr.bf16.mxu1 %v1426_v27 }
 0x6a4   :  { %v476_v58 = vpop.f32.mrb[2].mxu1 }
 0x6a5   :  { %v477_v60 = vadd.f32 %v476_v58, %v404_v57  ;;  %v478_v61 = vpop.f32.mrb[3].mxu1 }
 0x6a6   :  { %v479_v62 = vadd.f32 %v478_v61, %v405_v59 }
 0x6a7   :  { %v1054_v63 = vmul.f32 -1.442695, %v477_v60 }
 0x6a8   :  { %v1055_v6 = vmul.f32 -1.442695, %v479_v62 }
 0x6a9   :  { %1245 = vpow2.f32 %v1054_v63 }
 0x6aa   :  { %1247 = vtanh.f32 %v479_v62 }
 0x6b3   :  { %v1246_v0 = vpop.eup %1245 }
 0x6b4   :  { %v487_v2 = vadd.f32 1.0, %v1246_v0  ;;  %v1248_v3 = vpop.eup %1247 }
 0x6b6   :  { %1249 = vrcp.f32 %v487_v2 }
 0x6b7   :  { %1251 = vpow2.f32 %v1055_v6  ;;  %v708_v6 = vrot.slane %v1525_v18, 4 }
 0x6c0   :  { %v1250_v4 = vpop.eup %1249 }
 0x6c1   :  { %v495_v5 = vmul.f32 %v1250_v4, %v1248_v3  ;;  %v1252_v11 = vpop.eup %1251  ;;  %v494_v8 = vmul.f32 %v1250_v4, %v398_v52  ;;  %v607_v52 = vrot.slane %v1530_v23, 2 }
 0x6c2   :  { %v488_v7 = vadd.f32 1.0, %v1252_v11 }
 0x6c3   :  { %497 = vrot.lane.b32.xlu1 %v495_v5, %s1345_s1 }
 0x6c4   :  { %1253 = vrcp.f32 %v488_v7 }
 0x6ce   :  { %v1254_v12 = vpop.eup %1253 }
 0x735   :  { %v498_v16 = vpop.permute.xlu1 %497 }
 0x736   :  { %v500_v10 = vadd.f32 %v498_v16, %v494_v8 }
 0x738   :  { %1255 = vtanh.f32 %v500_v10 }
 0x742   :  { %v1256_v13 = vpop.eup %1255 }
 0x743   :  { %v502_v14 = vmul.f32 %v1256_v13, %v1254_v12 }
 0x745   :  { %504 = vrot.lane.b32.xlu0 %v502_v14, %s1345_s1 }
 0x7b7   :  { %v505_v17 = vpop.permute.xlu0 %504 }
 0x7b8   :  { %1056 = vmatmul.mubr.msk.f32.vlgmr.msra.gmra.mrb[6].mxu0 %vm203_vm3, %v505_v17 }
 0x7b9   :  { %1156 = vmatpush1.bf16.msra.mxu0 %v1428_v31  ;;  %778 = vmatprep.mubr.f32.mxu0 %v1344_v1 }
 0x7ba   :  { %1158 = vmatprep.subr.bf16.mxu0 %v1430_v32 }
 0x7bd   :  { %1160 = vmatpush1.bf16.msra.mxu0 %v1435_v37 }
 0x7be   :  { %1162 = vmatprep.subr.bf16.mxu0 %v1439_v38 }
 0x7c1   :  { %1164 = vmatpush1.bf16.msra.mxu0 %v1443_v43 }
 0x7c2   :  { %1166 = vmatprep.subr.bf16.mxu0 %v1447_v44 }
 0x7c5   :  { %1168 = vmatpush1.bf16.msra.mxu0 %v1451_v47 }
 0x7c6   :  { %1186 = vmatprep.subr.bf16.mxu0 %v1426_v27 }
 0x88b   :  { %v574_v19 = vpop.f32.mrb[6].mxu0 }
 0x88c   :  { %v575_v20 = vadd.f32 %v574_v19, %v1525_v18  ;;  %v576_v21 = vpop.f32.mrb[7].mxu0 }
 0x88d   :  { %v577_v26 = vadd.f32 %v576_v21, %v1530_v23 }
 0x88e   :  { %v1057_v22 = vmul.f32 -1.442695, %v575_v20 }
 0x88f   :  { %v1058_v33 = vmul.f32 -1.442695, %v577_v26 }
 0x890   :  { %1257 = vpow2.f32 %v1057_v22 }
 0x891   :  { %1259 = vtanh.f32 %v577_v26  ;;  %v810_v26 = vrot.slane %v1525_v18, 6 }
 0x89a   :  { %v1258_v28 = vpop.eup %1257 }
 0x89b   :  { %v585_v29 = vadd.f32 1.0, %v1258_v28  ;;  %v1260_v27 = vpop.eup %1259 }
 0x89d   :  { %1261 = vrcp.f32 %v585_v29 }
 0x89e   :  { %1263 = vpow2.f32 %v1058_v33 }
 0x8a7   :  { %v1262_v30 = vpop.eup %1261 }
 0x8a8   :  { %v593_v24 = vmul.f32 %v1262_v30, %v1260_v27  ;;  %v1264_v34 = vpop.eup %1263  ;;  %v592_v36 = vmul.f32 %v1262_v30, %v500_v10 }
 0x8a9   :  { %v586_v35 = vadd.f32 1.0, %v1264_v34 }
 0x8aa   :  { %595 = vrot.lane.b32.xlu1 %v593_v24, %s1345_s1  ;;  %v811_v24 = vrot.slane %v1530_v23, 6 }
 0x8ab   :  { %1265 = vrcp.f32 %v586_v35 }
 0x8b5   :  { %v1266_v25 = vpop.eup %1265 }
 0x91c   :  { %v596_v39 = vpop.permute.xlu1 %595 }
 0x91d   :  { %v598_v40 = vadd.f32 %v596_v39, %v592_v36 }
 0x91f   :  { %1267 = vtanh.f32 %v598_v40 }
 0x929   :  { %v1268_v41 = vpop.eup %1267 }
 0x92a   :  { %v600_v42 = vmul.f32 %v1268_v41, %v1266_v25 }
 0x92c   :  { %602 = vrot.lane.b32.xlu0 %v600_v42, %s1345_s1 }
 0x99e   :  { %v603_v45 = vpop.permute.xlu0 %602 }
 0x99f   :  { %1059 = vmatmul.mubr.msk.f32.vlgmr.msra.gmra.mrb[4].mxu1 %vm203_vm3, %v603_v45 }
 0x9a0   :  { %1172 = vmatpush1.bf16.msra.mxu1 %v1428_v31  ;;  %880 = vmatprep.mubr.f32.mxu1 %v1344_v1 }
 0x9a1   :  { %1174 = vmatprep.subr.bf16.mxu1 %v1430_v32 }
 0x9a4   :  { %1176 = vmatpush1.bf16.msra.mxu1 %v1435_v37 }
 0x9a5   :  { %1178 = vmatprep.subr.bf16.mxu1 %v1439_v38 }
 0x9a8   :  { %1180 = vmatpush1.bf16.msra.mxu1 %v1443_v43 }
 0x9a9   :  { %1182 = vmatprep.subr.bf16.mxu1 %v1447_v44 }
 0x9ac   :  { %1184 = vmatpush1.bf16.msra.mxu1 %v1451_v47 }
 0xa72   :  { %v678_v48 = vpop.f32.mrb[4].mxu1 }
 0xa73   :  { %v679_v49 = vadd.f32 %v678_v48, %v606_v46  ;;  %v680_v50 = vpop.f32.mrb[5].mxu1 }
 0xa74   :  { %v681_v53 = vadd.f32 %v680_v50, %v607_v52 }
 0xa75   :  { %v1060_v51 = vmul.f32 -1.442695, %v679_v49 }
 0xa76   :  { %v1061_v59 = vmul.f32 -1.442695, %v681_v53 }
 0xa77   :  { %1269 = vpow2.f32 %v1060_v51  ;;  %v1071_v51 = vld [vmem:[%s1580_s4] ss:$0 sm:$0xff]  ;;  %s1347_s4 = smov 32  }
 0xa78   :  { %1271 = vtanh.f32 %v681_v53 }
 0xa81   :  { %v1270_v54 = vpop.eup %1269 }
 0xa82   :  { %v689_v55 = vadd.f32 1.0, %v1270_v54  ;;  %v1272_v56 = vpop.eup %1271 }
 0xa84   :  { %1273 = vrcp.f32 %v689_v55 }
 0xa85   :  { %1275 = vpow2.f32 %v1061_v59 }
 0xa8e   :  { %v1274_v57 = vpop.eup %1273 }
 0xa8f   :  { %v697_v58 = vmul.f32 %v1274_v57, %v1272_v56  ;;  %v1276_v60 = vpop.eup %1275  ;;  %v696_v62 = vmul.f32 %v1274_v57, %v598_v40 }
 0xa90   :  { %v690_v61 = vadd.f32 1.0, %v1276_v60 }
 0xa91   :  { %699 = vrot.lane.b32.xlu1 %v697_v58, %s1345_s1 }
 0xa92   :  { %1277 = vrcp.f32 %v690_v61 }
 0xa9c   :  { %v1278_v2 = vpop.eup %1277 }
 0xb03   :  { %v700_v63 = vpop.permute.xlu1 %699 }
 0xb04   :  { %v702_v0 = vadd.f32 %v700_v63, %v696_v62 }
 0xb06   :  { %1279 = vtanh.f32 %v702_v0 }
 0xb10   :  { %v1280_v3 = vpop.eup %1279 }
 0xb11   :  { %v704_v4 = vmul.f32 %v1280_v3, %v1278_v2 }
 0xb13   :  { %706 = vrot.lane.b32.xlu0 %v704_v4, %s1345_s1 }
 0xb85   :  { %v707_v5 = vpop.permute.xlu0 %706 }
 0xb86   :  { %1062 = vmatmul.mubr.msk.f32.vlgmr.msra.gmra.mrb[8].mxu0 %vm203_vm3, %v707_v5 }
 0xb87   :  { %1188 = vmatpush1.bf16.msra.mxu0 %v1428_v31  ;;  %978 = vmatprep.mubr.f32.mxu0 %v1344_v1  ;;  %v709_v1 = vrot.slane %v1530_v23, 4 }
 0xb88   :  { %1190 = vmatprep.subr.bf16.mxu0 %v1430_v32 }
 0xb8b   :  { %1192 = vmatpush1.bf16.msra.mxu0 %v1435_v37 }
 0xb8c   :  { %1194 = vmatprep.subr.bf16.mxu0 %v1439_v38 }
 0xb8f   :  { %1196 = vmatpush1.bf16.msra.mxu0 %v1443_v43 }
 0xb90   :  { %1198 = vmatprep.subr.bf16.mxu0 %v1447_v44 }
 0xb93   :  { %1200 = vmatpush1.bf16.msra.mxu0 %v1451_v47 }
 0xc59   :  { %v780_v11 = vpop.f32.mrb[8].mxu0 }
 0xc5a   :  { %v781_v7 = vadd.f32 %v780_v11, %v708_v6  ;;  %v782_v8 = vpop.f32.mrb[9].mxu0 }
 0xc5b   :  { %v783_v32 = vadd.f32 %v782_v8, %v709_v1 }
 0xc5c   :  { %v1063_v31 = vmul.f32 -1.442695, %v781_v7 }
 0xc5d   :  { %v1064_v44 = vmul.f32 -1.442695, %v783_v32 }
 0xc5e   :  { %1281 = vpow2.f32 %v1063_v31  ;;  %v1072_v31 = vld [vmem:[#allocation2] ss:$0 sm:$0xff] }
 0xc5f   :  { %1283 = vtanh.f32 %v783_v32 }
 0xc68   :  { %v1282_v16 = vpop.eup %1281 }
 0xc69   :  { %v791_v37 = vadd.f32 1.0, %v1282_v16  ;;  %v1284_v38 = vpop.eup %1283 }
 0xc6b   :  { %1285 = vrcp.f32 %v791_v37 }
 0xc6c   :  { %1287 = vpow2.f32 %v1064_v44 }
 0xc75   :  { %v1286_v43 = vpop.eup %1285 }
 0xc76   :  { %v799_v10 = vmul.f32 %v1286_v43, %v1284_v38  ;;  %v1288_v47 = vpop.eup %1287  ;;  %v798_v13 = vmul.f32 %v1286_v43, %v702_v0 }
 0xc77   :  { %v792_v12 = vadd.f32 1.0, %v1288_v47 }
 0xc78   :  { %801 = vrot.lane.b32.xlu1 %v799_v10, %s1345_s1 }
 0xc79   :  { %1289 = vrcp.f32 %v792_v12 }
 0xc83   :  { %v1290_v19 = vpop.eup %1289 }
 0xcea   :  { %v802_v14 = vpop.permute.xlu1 %801 }
 0xceb   :  { %v804_v17 = vadd.f32 %v802_v14, %v798_v13 }
 0xced   :  { %1291 = vtanh.f32 %v804_v17 }
 0xcf7   :  { %v1292_v20 = vpop.eup %1291 }
 0xcf8   :  { %v806_v21 = vmul.f32 %v1292_v20, %v1290_v19 }
 0xcfa   :  { %808 = vrot.lane.b32.xlu0 %v806_v21, %s1345_s1 }
 0xd6c   :  { %v809_v22 = vpop.permute.xlu0 %808 }
 0xd6d   :  { %1065 = vmatmul.mubr.msk.f32.vlgmr.msra.gmra.mrb[6].mxu1 %vm203_vm3, %v809_v22 }
 0xe40   :  { %v882_v28 = vpop.f32.mrb[6].mxu1 }
 0xe41   :  { %v883_v29 = vadd.f32 %v882_v28, %v810_v26  ;;  %v884_v27 = vpop.f32.mrb[7].mxu1 }
 0xe42   :  { %v885_v33 = vadd.f32 %v884_v27, %v811_v24 }
 0xe43   :  { %v1066_v30 = vmul.f32 -1.442695, %v883_v29 }
 0xe44   :  { %v1067_v25 = vmul.f32 -1.442695, %v885_v33 }
 0xe45   :  { %1293 = vpow2.f32 %v1066_v30 }
 0xe46   :  { %1295 = vtanh.f32 %v885_v33 }
 0xe4f   :  { %v1294_v34 = vpop.eup %1293 }
 0xe50   :  { %v893_v35 = vadd.f32 1.0, %v1294_v34  ;;  %v1296_v36 = vpop.eup %1295 }
 0xe52   :  { %1297 = vrcp.f32 %v893_v35 }
 0xe53   :  { %1299 = vpow2.f32 %v1067_v25 }
 0xe5c   :  { %v1298_v39 = vpop.eup %1297 }
 0xe5d   :  { %v901_v40 = vmul.f32 %v1298_v39, %v1296_v36  ;;  %v1300_v18 = vpop.eup %1299  ;;  %v900_v42 = vmul.f32 %v1298_v39, %v804_v17 }
 0xe5e   :  { %v894_v41 = vadd.f32 1.0, %v1300_v18 }
 0xe5f   :  { %903 = vrot.lane.b32.xlu1 %v901_v40, %s1345_s1 }
 0xe60   :  { %1301 = vrcp.f32 %v894_v41 }
 0xe6a   :  { %v1302_v23 = vpop.eup %1301 }
 0xed1   :  { %v904_v45 = vpop.permute.xlu1 %903 }
 0xed2   :  { %v906_v46 = vadd.f32 %v904_v45, %v900_v42 }
 0xed4   :  { %1303 = vtanh.f32 %v906_v46 }
 0xede   :  { %v1304_v48 = vpop.eup %1303 }
 0xedf   :  { %v908_v49 = vmul.f32 %v1304_v48, %v1302_v23 }
 0xee1   :  { %910 = vrot.lane.b32.xlu0 %v908_v49, %s1345_s1 }
 0xee5   :  { %1013 = vrot.lane.b32.xlu0 %v1071_v51, %s1346_s19 }
 0xf53   :  { %v911_v50 = vpop.permute.xlu0 %910 }
 0xf54   :  { %1068 = vmatmul.mubr.msk.f32.vlgmr.msra.gmra.mrb[10].mxu0 %vm203_vm3, %v911_v50 }
 0xf57   :  { %v1014_v5 = vpop.permute.xlu0 %1013 }
0x1027   :  { %v980_v52 = vpop.f32.mrb[10].mxu0 }
0x1028   :  { %v981_v53 = vadd.f32 %v980_v52, %v1411_v9  ;;  %v982_v54 = vpop.f32.mrb[11].mxu0 }
0x1029   :  { %v983_v56 = vadd.f32 %v982_v54, %v1417_v15 }
0x102a   :  { %v1069_v55 = vmul.f32 -1.442695, %v981_v53 }
0x102b   :  { %v1070_v62 = vmul.f32 -1.442695, %v983_v56 }
0x102c   :  { %1305 = vpow2.f32 %v1069_v55 }
0x102d   :  { %1307 = vtanh.f32 %v983_v56 }
0x1036   :  { %v1306_v57 = vpop.eup %1305 }
0x1037   :  { %v991_v58 = vadd.f32 1.0, %v1306_v57  ;;  %v1308_v59 = vpop.eup %1307 }
0x1039   :  { %1309 = vrcp.f32 %v991_v58 }
0x103a   :  { %1311 = vpow2.f32 %v1070_v62 }
0x1043   :  { %v1310_v60 = vpop.eup %1309 }
0x1044   :  { %v999_v61 = vmul.f32 %v1310_v60, %v1308_v59  ;;  %v1312_v63 = vpop.eup %1311  ;;  %v998_v2 = vmul.f32 %v1310_v60, %v906_v46 }
0x1045   :  { %v992_v0 = vadd.f32 1.0, %v1312_v63 }
0x1046   :  { %1001 = vrot.lane.b32.xlu1 %v999_v61, %s1345_s1 }
0x1047   :  { %1313 = vrcp.f32 %v992_v0 }
0x1051   :  { %v1314_v4 = vpop.eup %1313 }
0x10b8   :  { %v1002_v9 = vpop.permute.xlu1 %1001 }
0x10b9   :  { %v1004_v3 = vadd.f32 %v1002_v9, %v998_v2 }
0x10bb   :  { %1315 = vtanh.f32 %v1004_v3 }
0x10c5   :  { %v1316_v15 = vpop.eup %1315 }
0x10c6   :  { %v1006_v6 = vmul.f32 %v1316_v15, %v1314_v4 }
0x10c8   :  { %v1016_v11 = vmul.f32 %v1014_v5, %v1006_v6 }
0x10ca   :  { %1018 = vrot.lane.b32.xlu1 %v1016_v11, %s1347_s4 }
0x113c   :  { %v1019_v7 = vpop.permute.xlu1 %1018 }
0x113d   :  { %v1022_v8 = vsel %vm1021_vm4, %v1019_v7, 0.0 }
0x113e   :  { %1023 = vadd.xlane.f32.xlu0 %v1022_v8 }
0x11cb   :  { %v1024_v1 = vpop.xlane.xlu0 %1023 }
0x11cc   :  { %v1032_v32 = vadd.f32 %v1072_v31, %v1024_v1 }
0x11ce   :  { %1034 = vst.msk [vmem:[%s1582_s6] sm:$0x3] %vm1033_vm5, %v1032_v32 }
0x11cf   :  { %1039 = vsyncpa [#allocation4], 1 }

</bundles_post_ra>
